<compile_context>
chip_gen: v6e
topology: v6e:2x2x1
jax: 0.10.0
libtpu: 0.0.40
codegen_flags: <defaults>
</compile_context>

<pallas_src>
import functools

import jax
import jax.numpy as jnp
from jax.experimental import pallas as pl
from jax.experimental.pallas import tpu as pltpu


def _round_up(x, m):
    return ((x + m - 1) // m) * m


def set2set_kernel(feat_ref, w_fused_ref, bias_ref, qexp_ref, ssum_ref,
                   aexp_ref, rsum_ref, out_ref, *, n_iters, in_dim, n_nodes):
    TB = feat_ref.shape[0]
    D = in_dim
    N = n_nodes

    w_fused = w_fused_ref[...]        # [2D, 4D]  (W_ih^T with W_hh^T folded in)
    bias = bias_ref[...]              # [1, 4D]   (b_ih + b_hh)
    q_expand = qexp_ref[...]          # [D, N*D]  q -> tiled-per-set expansion
    score_sum = ssum_ref[...]         # [N*D, N]  per-set group sum
    a_expand = aexp_ref[...]          # [N, N*D]  alpha -> per-element expansion
    r_sum = rsum_ref[...]             # [N*D, D]  strided sum over the set dim

    # Recurrent state carried across the unrolled iterations (h == q_star[:, :D]
    # so only the cell state and q_star are needed).
    c = jnp.zeros((TB, D), jnp.float32)
    q_star = jnp.zeros((TB, 2 * D), jnp.float32)

    for _ in range(n_iters):          # n_iters is small: unroll
        # --- LSTM cell: single fused 128-lane gate matmul --------------------
        gates = jnp.dot(q_star, w_fused,
                        preferred_element_type=jnp.float32) + bias     # [TB,4D]
        sg = jax.nn.sigmoid(gates)            # full-width EUP pass (i,f,_,o)
        i_g = sg[:, 0:D]
        f_g = sg[:, D:2 * D]
        o_g = sg[:, 3 * D:4 * D]
        g_g = jnp.tanh(gates[:, 2 * D:3 * D])
        c = f_g * c + i_g * g_g
        q = o_g * jnp.tanh(c)                 # == h                    [TB, D]

        # --- attention readout over the set dim, all 2-D / lane-dense --------
        q_t = jnp.dot(q, q_expand, preferred_element_type=jnp.float32)  # [TB,N*D]
        scores = jnp.dot(feat_ref[...] * q_t, score_sum,
                         preferred_element_type=jnp.float32)            # [TB,N]
        m = jnp.max(scores, axis=-1, keepdims=True)
        e = jnp.exp(scores - m)
        alpha = e * pl.reciprocal(jnp.sum(e, axis=-1, keepdims=True))   # softmax
        a_t = jnp.dot(alpha, a_expand, preferred_element_type=jnp.float32)
        readout = jnp.dot(feat_ref[...] * a_t, r_sum,
                          preferred_element_type=jnp.float32)           # [TB,D]

        q_star = jnp.concatenate([q, readout], axis=-1)                 # [TB,2D]

    # Lane-dense (128-multiple) output store; wrapper slices back to 2D lanes.
    pad_w = out_ref.shape[1] - 2 * D
    if pad_w:
        out_ref[...] = jnp.concatenate(
            [q_star, jnp.zeros((TB, pad_w), jnp.float32)], axis=-1)
    else:
        out_ref[...] = q_star


def set2set_forward(feat, params, n_iters=3):
    B, N, D = feat.shape
    ND = N * D
    OUT = 2 * D
    OUT_PAD = _round_up(OUT, 128)     # avoid masked partial stores
    f32 = jnp.float32

    # ---- weight prep (wrapper-side layout plumbing, not kernel work) --------
    w_ih_t = jnp.transpose(params["W_ih"]).astype(f32)       # [2D, 4D]
    w_hh_t = jnp.transpose(params["W_hh"]).astype(f32)       # [D, 4D]
    # The hidden state fed to the LSTM each iteration equals q_star[:, :D],
    # so W_hh folds exactly into the first D rows of W_ih^T.
    w_fused = jnp.concatenate([w_ih_t[:D, :] + w_hh_t, w_ih_t[D:, :]], axis=0)
    bias = (params["b_ih"] + params["b_hh"]).reshape(1, 4 * D).astype(f32)

    # Constant 0/1 matrices expressing the per-set reductions as MXU matmuls on
    # a lane-dense [B, N*D] feat layout (no 3-D blocks / in-kernel reshapes).
    cols = jnp.arange(ND)
    q_expand = (cols[None, :] % D == jnp.arange(D)[:, None]).astype(f32)    # [D, ND]
    score_sum = (cols[:, None] // D == jnp.arange(N)[None, :]).astype(f32)  # [ND, N]
    a_expand = (cols[None, :] // D == jnp.arange(N)[:, None]).astype(f32)   # [N, ND]
    r_sum = (cols[:, None] % D == jnp.arange(D)[None, :]).astype(f32)       # [ND, D]

    feat2 = feat.reshape(B, ND).astype(f32)   # contiguous 1 KiB rows

    # ---- batch tiling --------------------------------------------------------
    # Big tiles amortize the ~0.35us per-step overhead; cap keeps the working
    # set small even on v7x (64 MiB physical VMEM); when B allows it, split the
    # grid >=2 ways so both v7x TensorCores get work.
    TB_CAP = 1024
    if B <= 8:
        TB = 8
    else:
        TB = min(TB_CAP, _round_up((B + 1) // 2, 8))
    B_pad = _round_up(B, TB)
    if B_pad != B:
        # Padded rows compute a bias-driven (nonzero) q_star; they are sliced
        # off below and never used.
        feat2 = jnp.pad(feat2, ((0, B_pad - B), (0, 0)))
    grid = (B_pad // TB,)

    # VMEM budget: double-buffered feat + out tiles plus weights/intermediates.
    tile_bytes = TB * (ND + OUT_PAD) * 4
    vmem_limit = int(min(64 * 1024 * 1024, max(8 * 1024 * 1024, 6 * tile_bytes)))

    kernel = functools.partial(set2set_kernel, n_iters=n_iters,
                               in_dim=D, n_nodes=N)
    out = pl.pallas_call(
        kernel,
        out_shape=jax.ShapeDtypeStruct((B_pad, OUT_PAD), f32),
        grid_spec=pltpu.PrefetchScalarGridSpec(
            num_scalar_prefetch=0,
            grid=grid,
            in_specs=[
                pl.BlockSpec((TB, ND), lambda i: (i, 0)),          # feat tile
                pl.BlockSpec((2 * D, 4 * D), lambda i: (0, 0)),    # fused weight
                pl.BlockSpec((1, 4 * D), lambda i: (0, 0)),        # fused bias
                pl.BlockSpec((D, ND), lambda i: (0, 0)),           # q expand
                pl.BlockSpec((ND, N), lambda i: (0, 0)),           # score group-sum
                pl.BlockSpec((N, ND), lambda i: (0, 0)),           # alpha expand
                pl.BlockSpec((ND, D), lambda i: (0, 0)),           # readout sum
            ],
            out_specs=pl.BlockSpec((TB, OUT_PAD), lambda i: (i, 0)),
        ),
        compiler_params=pltpu.CompilerParams(
            dimension_semantics=("parallel",),       # megacore split on v7x
            vmem_limit_bytes=vmem_limit,
        ),
    )(feat2, w_fused, bias, q_expand, score_sum, a_expand, r_sum)
    return out[:B, :OUT]


def reference(feat, params, n_iters=3):
    """Pure-JAX transliteration of the PyTorch Set2Set.forward (verification)."""
    B, N, D = feat.shape
    W_ih, W_hh = params["W_ih"], params["W_hh"]
    b_ih, b_hh = params["b_ih"], params["b_hh"]
    h = jnp.zeros((B, D), jnp.float32)
    c = jnp.zeros((B, D), jnp.float32)
    q_star = jnp.zeros((B, 2 * D), jnp.float32)
    for _ in range(n_iters):
        gates = q_star @ W_ih.T + b_ih + h @ W_hh.T + b_hh
        i_g, f_g, g_g, o_g = jnp.split(gates, 4, axis=-1)   # PyTorch order i,f,g,o
        i_g = jax.nn.sigmoid(i_g)
        f_g = jax.nn.sigmoid(f_g)
        g_g = jnp.tanh(g_g)
        o_g = jax.nn.sigmoid(o_g)
        c = f_g * c + i_g * g_g
        h = o_g * jnp.tanh(c)
        q = h
        scores = jnp.sum(q[:, None, :] * feat, axis=-1, keepdims=True)  # [B,N,1]
        alpha = jax.nn.softmax(scores, axis=1)
        readout = jnp.sum(feat * alpha, axis=1)
        q_star = jnp.concatenate([q, readout], axis=-1)
    return q_star


if __name__ == "__main__":
    B, N, D = 2, 8, 32          # batch, set size, in_dim  -> out_dim = 64
    n_iters = 3

    key = jax.random.PRNGKey(0)
    ks = jax.random.split(key, 5)
    feat = jax.random.normal(ks[0], (B, N, D), jnp.float32)
    params = dict(
        W_ih=jax.random.normal(ks[1], (4 * D, 2 * D), jnp.float32) * 0.1,  # lstm.weight_ih_l0
        W_hh=jax.random.normal(ks[2], (4 * D, D), jnp.float32) * 0.1,      # lstm.weight_hh_l0
        b_ih=jax.random.normal(ks[3], (4 * D,), jnp.float32) * 0.1,        # lstm.bias_ih_l0
        b_hh=jax.random.normal(ks[4], (4 * D,), jnp.float32) * 0.1,        # lstm.bias_hh_l0
    )

    out = set2set_forward(feat, params, n_iters=n_iters)
    jax.block_until_ready(out)

    ref = reference(feat, params, n_iters=n_iters)
    assert out.shape == (B, 2 * D), out.shape
    assert jnp.allclose(out, ref, atol=1e-4, rtol=1e-4), \
        float(jnp.max(jnp.abs(out - ref)))

    print("KERNEL_OK")
</pallas_src>

<mosaic_0001>
module attributes {stable_mosaic.version = 11 : i64} {
  func.func @set2set_kernel(%arg0: i32, %arg1: memref<8x256xf32, #tpu.memory_space<vmem>>, %arg2: memref<64x128xf32, #tpu.memory_space<vmem>>, %arg3: memref<1x128xf32, #tpu.memory_space<vmem>>, %arg4: memref<32x256xf32, #tpu.memory_space<vmem>>, %arg5: memref<256x8xf32, #tpu.memory_space<vmem>>, %arg6: memref<8x256xf32, #tpu.memory_space<vmem>>, %arg7: memref<256x32xf32, #tpu.memory_space<vmem>>, %arg8: memref<8x128xf32, #tpu.memory_space<vmem>>) attributes {dimension_semantics = [#tpu.dimension_semantics<parallel>], iteration_bounds = array<i64: 1>, scalar_prefetch = 0 : i64, scratch_operands = 0 : i64, tpu.core_type = #tpu.core_type<tc>, window_params = [{transform_indices = @transform_0, window_bounds = array<i64: 8, 256>}, {pipeline_mode = #tpu.pipeline_mode<synchronous>, transform_indices = @transform_1, window_bounds = array<i64: 64, 128>}, {pipeline_mode = #tpu.pipeline_mode<synchronous>, transform_indices = @transform_2, window_bounds = array<i64: 1, 128>}, {pipeline_mode = #tpu.pipeline_mode<synchronous>, transform_indices = @transform_3, window_bounds = array<i64: 32, 256>}, {pipeline_mode = #tpu.pipeline_mode<synchronous>, transform_indices = @transform_4, window_bounds = array<i64: 256, 8>}, {pipeline_mode = #tpu.pipeline_mode<synchronous>, transform_indices = @transform_5, window_bounds = array<i64: 8, 256>}, {pipeline_mode = #tpu.pipeline_mode<synchronous>, transform_indices = @transform_6, window_bounds = array<i64: 256, 32>}, {transform_indices = @transform_7, window_bounds = array<i64: 8, 128>}]} {
    %c0 = arith.constant 0 : index
    %c0_0 = arith.constant 0 : index
    %0 = vector.load %arg2[%c0, %c0_0] : memref<64x128xf32, #tpu.memory_space<vmem>>, vector<64x128xf32>
    %c0_1 = arith.constant 0 : index
    %c0_2 = arith.constant 0 : index
    %1 = vector.load %arg3[%c0_1, %c0_2] : memref<1x128xf32, #tpu.memory_space<vmem>>, vector<1x128xf32>
    %c0_3 = arith.constant 0 : index
    %c0_4 = arith.constant 0 : index
    %2 = vector.load %arg4[%c0_3, %c0_4] : memref<32x256xf32, #tpu.memory_space<vmem>>, vector<32x256xf32>
    %c0_5 = arith.constant 0 : index
    %c0_6 = arith.constant 0 : index
    %3 = vector.load %arg5[%c0_5, %c0_6] : memref<256x8xf32, #tpu.memory_space<vmem>>, vector<256x8xf32>
    %c0_7 = arith.constant 0 : index
    %c0_8 = arith.constant 0 : index
    %4 = vector.load %arg6[%c0_7, %c0_8] : memref<8x256xf32, #tpu.memory_space<vmem>>, vector<8x256xf32>
    %c0_9 = arith.constant 0 : index
    %c0_10 = arith.constant 0 : index
    %5 = vector.load %arg7[%c0_9, %c0_10] : memref<256x32xf32, #tpu.memory_space<vmem>>, vector<256x32xf32>
    %cst = arith.constant 0.000000e+00 : f32
    %6 = vector.broadcast %cst : f32 to vector<8x32xf32>
    %cst_11 = arith.constant 0.000000e+00 : f32
    %7 = vector.broadcast %cst_11 : f32 to vector<8x64xf32>
    %cst_12 = arith.constant dense<0.000000e+00> : vector<8x128xf32>
    %8 = tpu.matmul %7, %0, %cst_12 {dimension_numbers = #tpu.dot_dimension_numbers<[1], [0], [0], [1], [0, 0, 1, 1], [], []>} : vector<8x64xf32>, vector<64x128xf32>, vector<8x128xf32> -> vector<8x128xf32>
    %9 = vector.broadcast %1 : vector<1x128xf32> to vector<8x128xf32>
    %10 = arith.addf %8, %9 : vector<8x128xf32>
    %11 = arith.negf %10 : vector<8x128xf32>
    %12 = math.exp %11 : vector<8x128xf32>
    %cst_13 = arith.constant 1.000000e+00 : f32
    %13 = vector.broadcast %cst_13 : f32 to vector<8x128xf32>
    %14 = arith.addf %13, %12 : vector<8x128xf32>
    %15 = arith.divf %13, %14 : vector<8x128xf32>
    %16 = vector.extract_strided_slice %15 {offsets = [0, 0], sizes = [8, 32], strides = [1, 1]} : vector<8x128xf32> to vector<8x32xf32>
    %17 = vector.extract_strided_slice %15 {offsets = [0, 32], sizes = [8, 32], strides = [1, 1]} : vector<8x128xf32> to vector<8x32xf32>
    %18 = vector.extract_strided_slice %15 {offsets = [0, 96], sizes = [8, 32], strides = [1, 1]} : vector<8x128xf32> to vector<8x32xf32>
    %19 = vector.extract_strided_slice %10 {offsets = [0, 64], sizes = [8, 32], strides = [1, 1]} : vector<8x128xf32> to vector<8x32xf32>
    %20 = math.tanh %19 : vector<8x32xf32>
    %21 = arith.mulf %17, %6 : vector<8x32xf32>
    %22 = arith.mulf %16, %20 : vector<8x32xf32>
    %23 = arith.addf %21, %22 : vector<8x32xf32>
    %24 = math.tanh %23 : vector<8x32xf32>
    %25 = arith.mulf %18, %24 : vector<8x32xf32>
    %cst_14 = arith.constant dense<0.000000e+00> : vector<8x256xf32>
    %26 = tpu.matmul %25, %2, %cst_14 {dimension_numbers = #tpu.dot_dimension_numbers<[1], [0], [0], [1], [0, 0, 1, 1], [], []>} : vector<8x32xf32>, vector<32x256xf32>, vector<8x256xf32> -> vector<8x256xf32>
    %c0_15 = arith.constant 0 : index
    %c0_16 = arith.constant 0 : index
    %27 = vector.load %arg1[%c0_15, %c0_16] : memref<8x256xf32, #tpu.memory_space<vmem>>, vector<8x256xf32>
    %28 = arith.mulf %27, %26 : vector<8x256xf32>
    %cst_17 = arith.constant dense<0.000000e+00> : vector<8x8xf32>
    %29 = tpu.matmul %28, %3, %cst_17 {dimension_numbers = #tpu.dot_dimension_numbers<[1], [0], [0], [1], [0, 0, 1, 1], [], []>} : vector<8x256xf32>, vector<256x8xf32>, vector<8x8xf32> -> vector<8x8xf32>
    %cst_18 = arith.constant dense<0xFF800000> : vector<8xf32>
    %30 = vector.multi_reduction <maximumf>, %29, %cst_18 [1] : vector<8x8xf32> to vector<8xf32>
    %31 = vector.shape_cast %30 : vector<8xf32> to vector<8x1xf32>
    %32 = vector.broadcast %31 : vector<8x1xf32> to vector<8x8xf32>
    %33 = arith.subf %29, %32 : vector<8x8xf32>
    %34 = math.exp %33 : vector<8x8xf32>
    %cst_19 = arith.constant dense<0.000000e+00> : vector<8xf32>
    %35 = vector.multi_reduction <add>, %34, %cst_19 [1] : vector<8x8xf32> to vector<8xf32>
    %36 = vector.shape_cast %35 : vector<8xf32> to vector<8x1xf32>
    %37 = tpu.reciprocal %36 : vector<8x1xf32> -> vector<8x1xf32>
    %38 = vector.broadcast %37 : vector<8x1xf32> to vector<8x8xf32>
    %39 = arith.mulf %34, %38 : vector<8x8xf32>
    %cst_20 = arith.constant dense<0.000000e+00> : vector<8x256xf32>
    %40 = tpu.matmul %39, %4, %cst_20 {dimension_numbers = #tpu.dot_dimension_numbers<[1], [0], [0], [1], [0, 0, 1, 1], [], []>} : vector<8x8xf32>, vector<8x256xf32>, vector<8x256xf32> -> vector<8x256xf32>
    %c0_21 = arith.constant 0 : index
    %c0_22 = arith.constant 0 : index
    %41 = vector.load %arg1[%c0_21, %c0_22] : memref<8x256xf32, #tpu.memory_space<vmem>>, vector<8x256xf32>
    %42 = arith.mulf %41, %40 : vector<8x256xf32>
    %cst_23 = arith.constant dense<0.000000e+00> : vector<8x32xf32>
    %43 = tpu.matmul %42, %5, %cst_23 {dimension_numbers = #tpu.dot_dimension_numbers<[1], [0], [0], [1], [0, 0, 1, 1], [], []>} : vector<8x256xf32>, vector<256x32xf32>, vector<8x32xf32> -> vector<8x32xf32>
    %44 = tpu.concatenate %25, %43 in 1 : vector<8x32xf32>, vector<8x32xf32> -> vector<8x64xf32>
    %cst_24 = arith.constant dense<0.000000e+00> : vector<8x128xf32>
    %45 = tpu.matmul %44, %0, %cst_24 {dimension_numbers = #tpu.dot_dimension_numbers<[1], [0], [0], [1], [0, 0, 1, 1], [], []>} : vector<8x64xf32>, vector<64x128xf32>, vector<8x128xf32> -> vector<8x128xf32>
    %46 = vector.broadcast %1 : vector<1x128xf32> to vector<8x128xf32>
    %47 = arith.addf %45, %46 : vector<8x128xf32>
    %48 = arith.negf %47 : vector<8x128xf32>
    %49 = math.exp %48 : vector<8x128xf32>
    %cst_25 = arith.constant 1.000000e+00 : f32
    %50 = vector.broadcast %cst_25 : f32 to vector<8x128xf32>
    %51 = arith.addf %50, %49 : vector<8x128xf32>
    %52 = arith.divf %50, %51 : vector<8x128xf32>
    %53 = vector.extract_strided_slice %52 {offsets = [0, 0], sizes = [8, 32], strides = [1, 1]} : vector<8x128xf32> to vector<8x32xf32>
    %54 = vector.extract_strided_slice %52 {offsets = [0, 32], sizes = [8, 32], strides = [1, 1]} : vector<8x128xf32> to vector<8x32xf32>
    %55 = vector.extract_strided_slice %52 {offsets = [0, 96], sizes = [8, 32], strides = [1, 1]} : vector<8x128xf32> to vector<8x32xf32>
    %56 = vector.extract_strided_slice %47 {offsets = [0, 64], sizes = [8, 32], strides = [1, 1]} : vector<8x128xf32> to vector<8x32xf32>
    %57 = math.tanh %56 : vector<8x32xf32>
    %58 = arith.mulf %54, %23 : vector<8x32xf32>
    %59 = arith.mulf %53, %57 : vector<8x32xf32>
    %60 = arith.addf %58, %59 : vector<8x32xf32>
    %61 = math.tanh %60 : vector<8x32xf32>
    %62 = arith.mulf %55, %61 : vector<8x32xf32>
    %cst_26 = arith.constant dense<0.000000e+00> : vector<8x256xf32>
    %63 = tpu.matmul %62, %2, %cst_26 {dimension_numbers = #tpu.dot_dimension_numbers<[1], [0], [0], [1], [0, 0, 1, 1], [], []>} : vector<8x32xf32>, vector<32x256xf32>, vector<8x256xf32> -> vector<8x256xf32>
    %c0_27 = arith.constant 0 : index
    %c0_28 = arith.constant 0 : index
    %64 = vector.load %arg1[%c0_27, %c0_28] : memref<8x256xf32, #tpu.memory_space<vmem>>, vector<8x256xf32>
    %65 = arith.mulf %64, %63 : vector<8x256xf32>
    %cst_29 = arith.constant dense<0.000000e+00> : vector<8x8xf32>
    %66 = tpu.matmul %65, %3, %cst_29 {dimension_numbers = #tpu.dot_dimension_numbers<[1], [0], [0], [1], [0, 0, 1, 1], [], []>} : vector<8x256xf32>, vector<256x8xf32>, vector<8x8xf32> -> vector<8x8xf32>
    %cst_30 = arith.constant dense<0xFF800000> : vector<8xf32>
    %67 = vector.multi_reduction <maximumf>, %66, %cst_30 [1] : vector<8x8xf32> to vector<8xf32>
    %68 = vector.shape_cast %67 : vector<8xf32> to vector<8x1xf32>
    %69 = vector.broadcast %68 : vector<8x1xf32> to vector<8x8xf32>
    %70 = arith.subf %66, %69 : vector<8x8xf32>
    %71 = math.exp %70 : vector<8x8xf32>
    %cst_31 = arith.constant dense<0.000000e+00> : vector<8xf32>
    %72 = vector.multi_reduction <add>, %71, %cst_31 [1] : vector<8x8xf32> to vector<8xf32>
    %73 = vector.shape_cast %72 : vector<8xf32> to vector<8x1xf32>
    %74 = tpu.reciprocal %73 : vector<8x1xf32> -> vector<8x1xf32>
    %75 = vector.broadcast %74 : vector<8x1xf32> to vector<8x8xf32>
    %76 = arith.mulf %71, %75 : vector<8x8xf32>
    %cst_32 = arith.constant dense<0.000000e+00> : vector<8x256xf32>
    %77 = tpu.matmul %76, %4, %cst_32 {dimension_numbers = #tpu.dot_dimension_numbers<[1], [0], [0], [1], [0, 0, 1, 1], [], []>} : vector<8x8xf32>, vector<8x256xf32>, vector<8x256xf32> -> vector<8x256xf32>
    %c0_33 = arith.constant 0 : index
    %c0_34 = arith.constant 0 : index
    %78 = vector.load %arg1[%c0_33, %c0_34] : memref<8x256xf32, #tpu.memory_space<vmem>>, vector<8x256xf32>
    %79 = arith.mulf %78, %77 : vector<8x256xf32>
    %cst_35 = arith.constant dense<0.000000e+00> : vector<8x32xf32>
    %80 = tpu.matmul %79, %5, %cst_35 {dimension_numbers = #tpu.dot_dimension_numbers<[1], [0], [0], [1], [0, 0, 1, 1], [], []>} : vector<8x256xf32>, vector<256x32xf32>, vector<8x32xf32> -> vector<8x32xf32>
    %81 = tpu.concatenate %62, %80 in 1 : vector<8x32xf32>, vector<8x32xf32> -> vector<8x64xf32>
    %cst_36 = arith.constant dense<0.000000e+00> : vector<8x128xf32>
    %82 = tpu.matmul %81, %0, %cst_36 {dimension_numbers = #tpu.dot_dimension_numbers<[1], [0], [0], [1], [0, 0, 1, 1], [], []>} : vector<8x64xf32>, vector<64x128xf32>, vector<8x128xf32> -> vector<8x128xf32>
    %83 = vector.broadcast %1 : vector<1x128xf32> to vector<8x128xf32>
    %84 = arith.addf %82, %83 : vector<8x128xf32>
    %85 = arith.negf %84 : vector<8x128xf32>
    %86 = math.exp %85 : vector<8x128xf32>
    %cst_37 = arith.constant 1.000000e+00 : f32
    %87 = vector.broadcast %cst_37 : f32 to vector<8x128xf32>
    %88 = arith.addf %87, %86 : vector<8x128xf32>
    %89 = arith.divf %87, %88 : vector<8x128xf32>
    %90 = vector.extract_strided_slice %89 {offsets = [0, 0], sizes = [8, 32], strides = [1, 1]} : vector<8x128xf32> to vector<8x32xf32>
    %91 = vector.extract_strided_slice %89 {offsets = [0, 32], sizes = [8, 32], strides = [1, 1]} : vector<8x128xf32> to vector<8x32xf32>
    %92 = vector.extract_strided_slice %89 {offsets = [0, 96], sizes = [8, 32], strides = [1, 1]} : vector<8x128xf32> to vector<8x32xf32>
    %93 = vector.extract_strided_slice %84 {offsets = [0, 64], sizes = [8, 32], strides = [1, 1]} : vector<8x128xf32> to vector<8x32xf32>
    %94 = math.tanh %93 : vector<8x32xf32>
    %95 = arith.mulf %91, %60 : vector<8x32xf32>
    %96 = arith.mulf %90, %94 : vector<8x32xf32>
    %97 = arith.addf %95, %96 : vector<8x32xf32>
    %98 = math.tanh %97 : vector<8x32xf32>
    %99 = arith.mulf %92, %98 : vector<8x32xf32>
    %cst_38 = arith.constant dense<0.000000e+00> : vector<8x256xf32>
    %100 = tpu.matmul %99, %2, %cst_38 {dimension_numbers = #tpu.dot_dimension_numbers<[1], [0], [0], [1], [0, 0, 1, 1], [], []>} : vector<8x32xf32>, vector<32x256xf32>, vector<8x256xf32> -> vector<8x256xf32>
    %c0_39 = arith.constant 0 : index
    %c0_40 = arith.constant 0 : index
    %101 = vector.load %arg1[%c0_39, %c0_40] : memref<8x256xf32, #tpu.memory_space<vmem>>, vector<8x256xf32>
    %102 = arith.mulf %101, %100 : vector<8x256xf32>
    %cst_41 = arith.constant dense<0.000000e+00> : vector<8x8xf32>
    %103 = tpu.matmul %102, %3, %cst_41 {dimension_numbers = #tpu.dot_dimension_numbers<[1], [0], [0], [1], [0, 0, 1, 1], [], []>} : vector<8x256xf32>, vector<256x8xf32>, vector<8x8xf32> -> vector<8x8xf32>
    %cst_42 = arith.constant dense<0xFF800000> : vector<8xf32>
    %104 = vector.multi_reduction <maximumf>, %103, %cst_42 [1] : vector<8x8xf32> to vector<8xf32>
    %105 = vector.shape_cast %104 : vector<8xf32> to vector<8x1xf32>
    %106 = vector.broadcast %105 : vector<8x1xf32> to vector<8x8xf32>
    %107 = arith.subf %103, %106 : vector<8x8xf32>
    %108 = math.exp %107 : vector<8x8xf32>
    %cst_43 = arith.constant dense<0.000000e+00> : vector<8xf32>
    %109 = vector.multi_reduction <add>, %108, %cst_43 [1] : vector<8x8xf32> to vector<8xf32>
    %110 = vector.shape_cast %109 : vector<8xf32> to vector<8x1xf32>
    %111 = tpu.reciprocal %110 : vector<8x1xf32> -> vector<8x1xf32>
    %112 = vector.broadcast %111 : vector<8x1xf32> to vector<8x8xf32>
    %113 = arith.mulf %108, %112 : vector<8x8xf32>
    %cst_44 = arith.constant dense<0.000000e+00> : vector<8x256xf32>
    %114 = tpu.matmul %113, %4, %cst_44 {dimension_numbers = #tpu.dot_dimension_numbers<[1], [0], [0], [1], [0, 0, 1, 1], [], []>} : vector<8x8xf32>, vector<8x256xf32>, vector<8x256xf32> -> vector<8x256xf32>
    %c0_45 = arith.constant 0 : index
    %c0_46 = arith.constant 0 : index
    %115 = vector.load %arg1[%c0_45, %c0_46] : memref<8x256xf32, #tpu.memory_space<vmem>>, vector<8x256xf32>
    %116 = arith.mulf %115, %114 : vector<8x256xf32>
    %cst_47 = arith.constant dense<0.000000e+00> : vector<8x32xf32>
    %117 = tpu.matmul %116, %5, %cst_47 {dimension_numbers = #tpu.dot_dimension_numbers<[1], [0], [0], [1], [0, 0, 1, 1], [], []>} : vector<8x256xf32>, vector<256x32xf32>, vector<8x32xf32> -> vector<8x32xf32>
    %118 = tpu.concatenate %99, %117 in 1 : vector<8x32xf32>, vector<8x32xf32> -> vector<8x64xf32>
    %cst_48 = arith.constant 0.000000e+00 : f32
    %119 = vector.broadcast %cst_48 : f32 to vector<8x64xf32>
    %120 = tpu.concatenate %118, %119 in 1 : vector<8x64xf32>, vector<8x64xf32> -> vector<8x128xf32>
    %c0_49 = arith.constant 0 : index
    %c0_50 = arith.constant 0 : index
    %121 = vector.load %arg8[%c0_49, %c0_50] : memref<8x128xf32, #tpu.memory_space<vmem>>, vector<8x128xf32>
    tpu.vector_store %arg8[%c0_49, %c0_50], %120 {strides = array<i32>} : memref<8x128xf32, #tpu.memory_space<vmem>>, vector<8x128xf32>,
    return
  }
  func.func @transform_0(%arg0: i32) -> (i32, i32) {
    %c0_i32 = arith.constant 0 : i32
    %c0_i32_0 = arith.constant 0 : i32
    return %arg0, %c0_i32 : i32, i32
  }
  func.func @transform_1(%arg0: i32) -> (i32, i32) {
    %c0_i32 = arith.constant 0 : i32
    %c0_i32_0 = arith.constant 0 : i32
    %c0_i32_1 = arith.constant 0 : i32
    return %c0_i32, %c0_i32_0 : i32, i32
  }
  func.func @transform_2(%arg0: i32) -> (i32, i32) {
    %c0_i32 = arith.constant 0 : i32
    %c0_i32_0 = arith.constant 0 : i32
    %c0_i32_1 = arith.constant 0 : i32
    return %c0_i32, %c0_i32_0 : i32, i32
  }
  func.func @transform_3(%arg0: i32) -> (i32, i32) {
    %c0_i32 = arith.constant 0 : i32
    %c0_i32_0 = arith.constant 0 : i32
    %c0_i32_1 = arith.constant 0 : i32
    return %c0_i32, %c0_i32_0 : i32, i32
  }
  func.func @transform_4(%arg0: i32) -> (i32, i32) {
    %c0_i32 = arith.constant 0 : i32
    %c0_i32_0 = arith.constant 0 : i32
    %c0_i32_1 = arith.constant 0 : i32
    return %c0_i32, %c0_i32_0 : i32, i32
  }
  func.func @transform_5(%arg0: i32) -> (i32, i32) {
    %c0_i32 = arith.constant 0 : i32
    %c0_i32_0 = arith.constant 0 : i32
    %c0_i32_1 = arith.constant 0 : i32
    return %c0_i32, %c0_i32_0 : i32, i32
  }
  func.func @transform_6(%arg0: i32) -> (i32, i32) {
    %c0_i32 = arith.constant 0 : i32
    %c0_i32_0 = arith.constant 0 : i32
    %c0_i32_1 = arith.constant 0 : i32
    return %c0_i32, %c0_i32_0 : i32, i32
  }
  func.func @transform_7(%arg0: i32) -> (i32, i32) {
    %c0_i32 = arith.constant 0 : i32
    %c0_i32_0 = arith.constant 0 : i32
    return %arg0, %c0_i32 : i32, i32
  }
}

</mosaic_0001>

<bundles_post_ra>
// kernel: tpu_custom_call.1
= control target key start
LH: loop header
LB: loop body
LE: loop exit
PB: predicated region body
PF: predicated region fallthrough
CT: control target
= control target key end

     0   :  { %v2562_v1 = vmov 0.0   ;;  %vm1731_vm0 = vmmov 0   ;;  %s2554_s0 = inlined_call_operand.vmem [shape: f32[8,256], index: 0, kind: input, shape index: {}]   ;;  %s2555_s1 = inlined_call_operand.vmem [shape: f32[64,128], index: 1, kind: input, shape index: {}]   ;;  %s2556_s2 = inlined_call_operand.vmem [shape: f32[1,128], index: 2, kind: input, shape index: {}]   ;;  %s2557_s3 = inlined_call_operand.vmem [shape: f32[32,256], index: 3, kind: input, shape index: {}]   ;;  %s2558_s4 = inlined_call_operand.vmem [shape: f32[256,8], index: 4, kind: input, shape index: {}]   ;;  %s2559_s5 = inlined_call_operand.vmem [shape: f32[8,256], index: 5, kind: input, shape index: {}]   ;;  %s2560_s6 = inlined_call_operand.vmem [shape: f32[256,32], index: 6, kind: input, shape index: {}]   ;;  %s2561_s7 = inlined_call_operand.hbm [shape: f32[8,128], index: 7, kind: output, shape index: {}]  }
   0x1   :  { %v1778_v0 = vld [vmem:[%s2555_s1 + $0x38] sm:$0xff]  ;;  %1610 = vmatprep.subr.mxu0 %v2562_v1  ;;  %v1784_v2 = vld [vmem:[%s2555_s1 + $0x30] sm:$0xff]  ;;  %1626 = vmatprep.mubr.msk.f32.mxu0 %vm1731_vm0, %v2562_v1  ;;  %v1794_v3 = vld [vmem:[%s2555_s1 + $0x28] sm:$0xff] }
   0x2   :  { %1611 = vmatpush3.msra.mxu0 %v1778_v0  ;;  %284 = vmatprep.mubr.f32.mxu1 %v2562_v1 }
   0x3   :  { %1612 = vmatprep.subr.mxu0 %v2562_v1 }
   0x4   :  { %12 = vsyncpa [#allocation3], 0  ;;  %1613 = vmatpush3.msra.mxu0 %v1784_v2  ;;  %v1801_v4 = vld [vmem:[%s2555_s1 + $0x20] sm:$0xff]  ;;  %v1808_v5 = vld [vmem:[%s2555_s1 + $0x18] sm:$0xff]  ;;  %s1733_s19 = smov 32   ;;  %vm217_vm1 = vcmask 261120  }
   0x5   :  { %1614 = vmatprep.subr.mxu0 %v2562_v1  ;;  %v1815_v6 = vld [vmem:[%s2555_s1 + $0x10] sm:$0xff]  ;;  %v1822_v7 = vld [vmem:[%s2555_s1 + $0x8] sm:$0xff]  ;;  %v1829_v8 = vld [vmem:[%s2555_s1] sm:$0xff]  ;;  %s1732_s1 = smov 64   ;;  %vm365_vm2 = vcmask 64512   ;;  %vm116_vm3 = vcmask 523264  }
   0x6   :  { %1615 = vmatpush3.msra.mxu0 %v1794_v3  ;;  %v1839_v9 = vld [vmem:[%s2556_s2] ss:$0 sm:$0xff]  ;;  %v1850_v23 = vld [vmem:[%s2557_s3 + $0x38] sm:$0xff]  ;;  %v1855_v24 = vld [vmem:[%s2557_s3 + $0x30] sm:$0xff] }
   0x7   :  { %1616 = vmatprep.subr.mxu0 %v2562_v1  ;;  %v1860_v25 = vld [vmem:[%s2557_s3 + $0x28] sm:$0xff]  ;;  %244 = vmatprep.subr.mxu1 %v1850_v23  ;;  %v1866_v26 = vld [vmem:[%s2557_s3 + $0x20] sm:$0xff]  ;;  %v1872_v27 = vld [vmem:[%s2557_s3 + $0x18] sm:$0xff] }
   0x8   :  { %1617 = vmatpush3.msra.mxu0 %v1801_v4  ;;  %2627 = vst [vmem:[#allocation5_spill] sm:$0xff] %v1866_v26  ;;  %245 = vmatpush1.msra.mxu1 %v1855_v24  ;;  %v1878_v28 = vld [vmem:[%s2557_s3 + $0x10] sm:$0xff]  ;;  %v1884_v29 = vld [vmem:[%s2557_s3 + $0x8] sm:$0xff]  ;;  %v1890_v30 = vld [vmem:[%s2557_s3] sm:$0xff] }
   0x9   :  { %1618 = vmatprep.subr.mxu0 %v2562_v1  ;;  %246 = vmatprep.subr.mxu1 %v1860_v25  ;;  %v1899_v32 = vld [vmem:[%s2558_s4 + $0xf8] sm:$0xff]  ;;  %v1913_v37 = vld [vmem:[%s2558_s4 + $0xf0] sm:$0xff]  ;;  %v1926_v39 = vld [vmem:[%s2558_s4 + $0xe8] sm:$0xff] }
   0xa   :  { %1619 = vmatpush3.msra.mxu0 %v1808_v5  ;;  %247 = vmatpush1.msra.mxu1 %v1866_v26  ;;  %2628 = vst [vmem:[#allocation6_spill] sm:$0xff] %v1899_v32  ;;  %v1906_v35 = vld [vmem:[%s2558_s4 + $0x78] sm:$0xff]  ;;  %v1920_v38 = vld [vmem:[%s2558_s4 + $0x70] sm:$0xff]  ;;  %v1932_v40 = vld [vmem:[%s2558_s4 + $0x68] sm:$0xff] }
   0xb   :  { %1620 = vmatprep.subr.mxu0 %v2562_v1  ;;  %248 = vmatprep.subr.mxu1 %v1872_v27  ;;  %v1938_v41 = vld [vmem:[%s2558_s4 + $0xe0] sm:$0xff]  ;;  %v1950_v43 = vld [vmem:[%s2558_s4 + $0xd8] sm:$0xff]  ;;  %v1962_v45 = vld [vmem:[%s2558_s4 + $0xd0] sm:$0xff] }
   0xc   :  { %1621 = vmatpush3.msra.mxu0 %v1815_v6  ;;  %249 = vmatpush1.msra.mxu1 %v1878_v28  ;;  %v1944_v42 = vld [vmem:[%s2558_s4 + $0x60] sm:$0xff]  ;;  %v1956_v44 = vld [vmem:[%s2558_s4 + $0x58] sm:$0xff]  ;;  %v1968_v46 = vld [vmem:[%s2558_s4 + $0x50] sm:$0xff] }
   0xd   :  { %1622 = vmatprep.subr.mxu0 %v2562_v1  ;;  %250 = vmatprep.subr.mxu1 %v1884_v29  ;;  %v1974_v47 = vld [vmem:[%s2558_s4 + $0xc8] sm:$0xff]  ;;  %v1986_v49 = vld [vmem:[%s2558_s4 + $0xc0] sm:$0xff]  ;;  %v1998_v51 = vld [vmem:[%s2558_s4 + $0xb8] sm:$0xff] }
   0xe   :  { %1623 = vmatpush3.msra.mxu0 %v1822_v7  ;;  %251 = vmatpush1.msra.mxu1 %v1890_v30  ;;  %v1980_v48 = vld [vmem:[%s2558_s4 + $0x48] sm:$0xff]  ;;  %v1992_v50 = vld [vmem:[%s2558_s4 + $0x40] sm:$0xff]  ;;  %v2004_v52 = vld [vmem:[%s2558_s4 + $0x38] sm:$0xff] }
   0xf   :  { %1624 = vmatprep.subr.mxu0 %v2562_v1  ;;  %1382 = vmatprep.subr.mxu1 %v1899_v32  ;;  %v2010_v53 = vld [vmem:[%s2558_s4 + $0xb0] sm:$0xff]  ;;  %v2022_v55 = vld [vmem:[%s2558_s4 + $0xa8] sm:$0xff]  ;;  %v2034_v57 = vld [vmem:[%s2558_s4 + $0xa0] sm:$0xff] }
  0x10   :  { %1625 = vmatpush3.msra.mxu0 %v1829_v8  ;;  %v2016_v54 = vld [vmem:[%s2558_s4 + $0x30] sm:$0xff]  ;;  %v2028_v56 = vld [vmem:[%s2558_s4 + $0x28] sm:$0xff]  ;;  %v2040_v58 = vld [vmem:[%s2558_s4 + $0x20] sm:$0xff] }
  0x11   :  { %1627 = vmatmul.mubr.f32.vlgmr.msra.gmra.mxu0 %v2562_v1  ;;  %v2046_v59 = vld [vmem:[%s2558_s4 + $0x98] sm:$0xff]  ;;  %v2060_v61 = vld [vmem:[%s2558_s4 + $0x90] sm:$0xff]  ;;  %v2072_v63 = vld [vmem:[%s2558_s4 + $0x88] sm:$0xff] }
  0x12   :  { %444 = vmatprep.mubr.f32.mxu0 %v2562_v1  ;;  %v2052_v60 = vld [vmem:[%s2558_s4 + $0x18] sm:$0xff]  ;;  %2630 = vst [vmem:[#allocation8_spill] sm:$0xff] %v2060_v61  ;;  %v2066_v62 = vld [vmem:[%s2558_s4 + $0x10] sm:$0xff]  ;;  %2632 = vst [vmem:[#allocation10_spill] sm:$0xff] %v2072_v63 }
  0x13   :  { %2629 = vst [vmem:[#allocation7_spill] sm:$0xff] %v2052_v60  ;;  %2631 = vst [vmem:[#allocation9_spill] sm:$0xff] %v2066_v62 }
  0xd1   :  { %v186_v10 = vpop.f32.mrf.mxu0 }
  0xd2   :  { %v187_v11 = vadd.f32 %v1839_v9, %v186_v10  ;;  %v2078_v10 = vld [vmem:[%s2558_s4 + $0x8] sm:$0xff] }
  0xd3   :  { %v1628_v12 = vpop.f32.mrf.mxu0  ;;  %2633 = vst [vmem:[#allocation11_spill] sm:$0xff] %v2078_v10 }
  0xd4   :  { %1672 = vtanh.f32 %v187_v11  ;;  %v1362_v14 = vmul.f32 -1.442695, %v187_v11  ;;  %v2084_v11 = vld [vmem:[%s2558_s4 + $0x80] sm:$0xff] }
  0xd5   :  { %2634 = vst [vmem:[#allocation12_spill] sm:$0xff] %v2084_v11  ;;  %v2089_v12 = vld [vmem:[%s2558_s4] sm:$0xff] }
  0xd6   :  { %1674 = vpow2.f32 %v1362_v14  ;;  %2635 = vst [vmem:[#allocation13_spill] sm:$0xff] %v2089_v12  ;;  %v2097_v14 = vld [vmem:[%s2554_s0 + $0x8] sm:$0xff] }
  0xe1   :  { %v1673_v13 = vpop.eup %1672 }
  0xe2   :  { %199 = vrot.lane.b32.xlu0 %v1673_v13, %s1732_s1 }
  0xe3   :  { %v1675_v15 = vpop.eup %1674 }
  0xe4   :  { %v193_v16 = vadd.f32 1.0, %v1675_v15  ;;  %v2102_v15 = vld [vmem:[%s2554_s0] sm:$0xff] }
  0xe6   :  { %1676 = vrcp.f32 %v193_v16 }
  0xf3   :  { %v1677_v17 = vpop.eup %1676 }
  0xf4   :  { %v197_v20 = vmul.f32 0.0, %v1677_v17 }
 0x154   :  { %v200_v18 = vpop.permute.xlu0 %199 }
 0x155   :  { %v202_v19 = vmul.f32 %v1677_v17, %v200_v18 }
 0x157   :  { %204 = vrot.lane.b32.xlu0 %v202_v19, %s1733_s19 }
 0x1c9   :  { %v205_v21 = vpop.permute.xlu0 %204 }
 0x1ca   :  { %v1844_v22 = vadd.f32 %v205_v21, %v197_v20 }
 0x1cc   :  { %1678 = vtanh.f32 %v1844_v22 }
 0x1d9   :  { %v1679_v31 = vpop.eup %1678 }
 0x1da   :  { %210 = vrot.lane.b32.xlu1 %v1679_v31, %s1732_s1 }
 0x24c   :  { %v211_v33 = vpop.permute.xlu1 %210 }
 0x24d   :  { %v213_v34 = vmul.f32 %v1677_v17, %v211_v33 }
 0x24f   :  { %215 = vrot.lane.b32.xlu1 %v213_v34, %s1733_s19 }
 0x2c1   :  { %v1908_v36 = vpop.permute.xlu1 %215 }
 0x2c2   :  { %1363 = vmatmul.mubr.msk.f32.vlgmr.msra.gmra.mxu1 %vm217_vm1, %v1908_v36 }
 0x2c3   :  { %1383 = vmatpush3.msra.mxu1 %v1906_v35 }
 0x2c4   :  { %1384 = vmatprep.subr.mxu1 %v1913_v37 }
 0x2c5   :  { %1385 = vmatpush3.msra.mxu1 %v1920_v38 }
 0x2c6   :  { %1386 = vmatprep.subr.mxu1 %v1926_v39 }
 0x2c7   :  { %1387 = vmatpush3.msra.mxu1 %v1932_v40 }
 0x2c8   :  { %1388 = vmatprep.subr.mxu1 %v1938_v41 }
 0x2c9   :  { %1389 = vmatpush3.msra.mxu1 %v1944_v42 }
 0x2ca   :  { %1390 = vmatprep.subr.mxu1 %v1950_v43 }
 0x2cb   :  { %1391 = vmatpush3.msra.mxu1 %v1956_v44 }
 0x2cc   :  { %1392 = vmatprep.subr.mxu1 %v1962_v45 }
 0x2cd   :  { %1393 = vmatpush3.msra.mxu1 %v1968_v46 }
 0x2ce   :  { %1394 = vmatprep.subr.mxu1 %v1974_v47 }
 0x2cf   :  { %1395 = vmatpush3.msra.mxu1 %v1980_v48 }
 0x2d0   :  { %1396 = vmatprep.subr.mxu1 %v1986_v49 }
 0x2d1   :  { %1397 = vmatpush3.msra.mxu1 %v1992_v50 }
 0x2d2   :  { %1398 = vmatprep.subr.mxu1 %v1998_v51 }
 0x2d3   :  { %1399 = vmatpush3.msra.mxu1 %v2004_v52 }
 0x2d4   :  { %1400 = vmatprep.subr.mxu1 %v2010_v53 }
 0x2d5   :  { %1401 = vmatpush3.msra.mxu1 %v2016_v54 }
 0x2d6   :  { %1402 = vmatprep.subr.mxu1 %v2022_v55 }
 0x2d7   :  { %1403 = vmatpush3.msra.mxu1 %v2028_v56 }
 0x2d8   :  { %1404 = vmatprep.subr.mxu1 %v2034_v57 }
 0x2d9   :  { %1405 = vmatpush3.msra.mxu1 %v2040_v58 }
 0x2da   :  { %1406 = vmatprep.subr.mxu1 %v2046_v59 }
 0x2db   :  { %1407 = vmatpush3.msra.mxu1 %v2052_v60 }
 0x2dc   :  { %1408 = vmatprep.subr.mxu1 %v2060_v61 }
 0x2dd   :  { %1409 = vmatpush3.msra.mxu1 %v2066_v62 }
 0x2de   :  { %1410 = vmatprep.subr.mxu1 %v2072_v63 }
 0x2df   :  { %1411 = vmatpush3.msra.mxu1 %v2078_v10 }
 0x2e0   :  { %1412 = vmatprep.subr.mxu1 %v2084_v11 }
 0x2e1   :  { %1413 = vmatpush3.msra.mxu1 %v2089_v12 }
 0x2e2   :  { %1629 = vmatprep.subr.mxu1 %v2562_v1 }
 0x382   :  { %v286_v13 = vpop.f32.mrf.mxu1 }
 0x383   :  { %v293_v18 = vmul.f32 %v2102_v15, %v286_v13 }
 0x384   :  { %v288_v16 = vpop.f32.mrf.mxu1 }
 0x385   :  { %v294_v17 = vmul.f32 %v2097_v14, %v288_v16 }
 0x387   :  { %359 = vmatprep.mubr.f32.mxu1 %v294_v17 }
 0x388   :  { %360 = vmatmul.mubr.f32.vlgmr.msra.gmra.mxu1 %v293_v18  ;;  %v2129_v18 = vld [vmem:[%s2559_s5 + $0x8] sm:$0xff] }
 0x389   :  { %1630 = vmatpush3.msra.mxu1 %v1778_v0  ;;  %1645 = vmatprep.mubr.msk.f32.mxu1 %vm1731_vm0, %v2562_v1 }
 0x38a   :  { %1631 = vmatprep.subr.mxu1 %v2562_v1  ;;  %410 = vmatprep.subr.mxu0 %v2129_v18 }
 0x38b   :  { %1632 = vmatpush3.msra.mxu1 %v1784_v2 }
 0x38c   :  { %1633 = vmatprep.subr.mxu1 %v2562_v1 }
 0x38d   :  { %1634 = vmatpush3.msra.mxu1 %v1794_v3 }
 0x38e   :  { %1635 = vmatprep.subr.mxu1 %v2562_v1 }
 0x38f   :  { %1636 = vmatpush3.msra.mxu1 %v1801_v4 }
 0x390   :  { %1637 = vmatprep.subr.mxu1 %v2562_v1 }
 0x391   :  { %1638 = vmatpush3.msra.mxu1 %v1808_v5 }
 0x392   :  { %1639 = vmatprep.subr.mxu1 %v2562_v1 }
 0x393   :  { %1640 = vmatpush3.msra.mxu1 %v1815_v6 }
 0x394   :  { %1641 = vmatprep.subr.mxu1 %v2562_v1 }
 0x395   :  { %1642 = vmatpush3.msra.mxu1 %v1822_v7 }
 0x396   :  { %1643 = vmatprep.subr.mxu1 %v2562_v1  ;;  %v2188_v1 = vld [vmem:[%s2560_s6 + $0xd8] sm:$0xff] }
 0x397   :  { %1644 = vmatpush3.msra.mxu1 %v1829_v8  ;;  %2641 = vst [vmem:[#allocation19_spill] sm:$0xff] %v2188_v1 }
 0x398   :  { %1461 = vmatprep.subr.mxu1 %v1899_v32  ;;  %v2194_v32 = vld [vmem:[%s2560_s6 + $0x58] sm:$0xff] }
 0x399   :  { %2642 = vst [vmem:[#allocation20_spill] sm:$0xff] %v2194_v32 }
 0x448   :  { %v1414_v19 = vpop.f32.mrf.mxu1 }
 0x44a   :  { %v1415_v20 = vpop.f32.mrf.mxu1 }
 0x44b   :  { %v1416_v21 = vadd.f32 %v1415_v20, %v1414_v19  ;;  %v2134_v19 = vld [vmem:[%s2559_s5] sm:$0xff]  ;;  %v2141_v20 = vld [vmem:[%s2560_s6 + $0xf8] sm:$0xff] }
 0x44c   :  { %411 = vmatpush1.msra.mxu0 %v2134_v19 }
 0x44d   :  { %v366_v31 = vsel %vm365_vm2, %v1416_v21, -inf  ;;  %1417 = vmatprep.subr.mxu0 %v2141_v20 }
 0x44e   :  { %367 = vmax.xlane.f32.xlu0 %v366_v31 }
 0x4d7   :  { %v368_v33 = vpop.xlane.xlu0 %367 }
 0x4d8   :  { %v369_v34 = vsub.f32 %v1416_v21, %v368_v33 }
 0x4da   :  { %v370_v13 = vmul.f32 1.442695, %v369_v34  ;;  %v2147_v34 = vld [vmem:[%s2560_s6 + $0x78] sm:$0xff] }
 0x4dc   :  { %1680 = vpow2.f32 %v370_v13  ;;  %v2152_v13 = vld [vmem:[%s2560_s6 + $0xf0] sm:$0xff] }
 0x4e9   :  { %v1681_v16 = vpop.eup %1680 }
 0x4ea   :  { %v372_v17 = vsel %vm365_vm2, %v1681_v16, 0.0 }
 0x4eb   :  { %373 = vadd.xlane.f32.xlu1 %v372_v17  ;;  %v2158_v17 = vld [vmem:[%s2560_s6 + $0x70] sm:$0xff] }
 0x4ec   :  { %2636 = vst [vmem:[#allocation14_spill] sm:$0xff] %v2158_v17 }
 0x574   :  { %v374_v21 = vpop.xlane.xlu1 %373 }
 0x575   :  { %1682 = vrcp.f32 %v374_v21  ;;  %v2170_v21 = vld [vmem:[%s2560_s6 + $0x68] sm:$0xff] }
 0x576   :  { %2638 = vst [vmem:[#allocation16_spill] sm:$0xff] %v2170_v21 }
 0x582   :  { %v1683_v31 = vpop.eup %1682 }
 0x583   :  { %v376_v33 = vmul.f32 %v1683_v31, %v1681_v16  ;;  %v2164_v16 = vld [vmem:[%s2560_s6 + $0xe8] sm:$0xff]  ;;  %v2176_v31 = vld [vmem:[%s2560_s6 + $0xe0] sm:$0xff] }
 0x584   :  { %2637 = vst [vmem:[#allocation15_spill] sm:$0xff] %v2164_v16  ;;  %2639 = vst [vmem:[#allocation17_spill] sm:$0xff] %v2176_v31 }
 0x585   :  { %1364 = vmatmul.mubr.msk.f32.vlgmr.msra.gmra.mxu0 %vm365_vm2, %v376_v33  ;;  %v2182_v33 = vld [vmem:[%s2560_s6 + $0x60] sm:$0xff] }
 0x586   :  { %1418 = vmatpush3.msra.mxu0 %v2147_v34  ;;  %2640 = vst [vmem:[#allocation18_spill] sm:$0xff] %v2182_v33 }
 0x587   :  { %1419 = vmatprep.subr.mxu0 %v2152_v13 }
 0x588   :  { %1420 = vmatpush3.msra.mxu0 %v2158_v17  ;;  %v2663_v17 = vmov 0.0  }
 0x589   :  { %1421 = vmatprep.subr.mxu0 %v2164_v16  ;;  %v2200_v16 = vld [vmem:[%s2560_s6 + $0xd0] sm:$0xff] }
 0x58a   :  { %1422 = vmatpush3.msra.mxu0 %v2170_v21  ;;  %2643 = vst [vmem:[#allocation21_spill] sm:$0xff] %v2200_v16  ;;  %v2206_v21 = vld [vmem:[%s2560_s6 + $0x50] sm:$0xff] }
 0x58b   :  { %1423 = vmatprep.subr.mxu0 %v2176_v31  ;;  %2644 = vst [vmem:[#allocation22_spill] sm:$0xff] %v2206_v21  ;;  %v2212_v31 = vld [vmem:[%s2560_s6 + $0xc8] sm:$0xff] }
 0x58c   :  { %1424 = vmatpush3.msra.mxu0 %v2182_v33  ;;  %2645 = vst [vmem:[#allocation23_spill] sm:$0xff] %v2212_v31  ;;  %v2218_v33 = vld [vmem:[%s2560_s6 + $0x48] sm:$0xff] }
 0x58d   :  { %1425 = vmatprep.subr.mxu0 %v2188_v1  ;;  %2646 = vst [vmem:[#allocation24_spill] sm:$0xff] %v2218_v33  ;;  %v2224_v1 = vld [vmem:[%s2560_s6 + $0xc0] sm:$0xff] }
 0x58e   :  { %1426 = vmatpush3.msra.mxu0 %v2194_v32  ;;  %2647 = vst [vmem:[#allocation25_spill] sm:$0xff] %v2224_v1  ;;  %v2230_v32 = vld [vmem:[%s2560_s6 + $0x40] sm:$0xff] }
 0x58f   :  { %1427 = vmatprep.subr.mxu0 %v2200_v16  ;;  %2648 = vst [vmem:[#allocation26_spill] sm:$0xff] %v2230_v32  ;;  %v2236_v16 = vld [vmem:[%s2560_s6 + $0xb8] sm:$0xff] }
 0x590   :  { %1428 = vmatpush3.msra.mxu0 %v2206_v21  ;;  %2649 = vst [vmem:[#allocation27_spill] sm:$0xff] %v2236_v16  ;;  %v2242_v21 = vld [vmem:[%s2560_s6 + $0x38] sm:$0xff] }
 0x591   :  { %1429 = vmatprep.subr.mxu0 %v2212_v31  ;;  %2650 = vst [vmem:[#allocation28_spill] sm:$0xff] %v2242_v21  ;;  %v2248_v31 = vld [vmem:[%s2560_s6 + $0xb0] sm:$0xff] }
 0x592   :  { %1430 = vmatpush3.msra.mxu0 %v2218_v33  ;;  %2651 = vst [vmem:[#allocation29_spill] sm:$0xff] %v2248_v31  ;;  %v2254_v33 = vld [vmem:[%s2560_s6 + $0x30] sm:$0xff] }
 0x593   :  { %1431 = vmatprep.subr.mxu0 %v2224_v1  ;;  %2652 = vst [vmem:[#allocation30_spill] sm:$0xff] %v2254_v33  ;;  %v2260_v1 = vld [vmem:[%s2560_s6 + $0xa8] sm:$0xff] }
 0x594   :  { %1432 = vmatpush3.msra.mxu0 %v2230_v32  ;;  %2653 = vst [vmem:[#allocation31_spill] sm:$0xff] %v2260_v1  ;;  %v2266_v32 = vld [vmem:[%s2560_s6 + $0x28] sm:$0xff] }
 0x595   :  { %1433 = vmatprep.subr.mxu0 %v2236_v16  ;;  %2654 = vst [vmem:[#allocation32_spill] sm:$0xff] %v2266_v32  ;;  %v2272_v16 = vld [vmem:[%s2560_s6 + $0xa0] sm:$0xff] }
 0x596   :  { %1434 = vmatpush3.msra.mxu0 %v2242_v21  ;;  %2655 = vst [vmem:[#allocation33_spill] sm:$0xff] %v2272_v16  ;;  %v2278_v21 = vld [vmem:[%s2560_s6 + $0x20] sm:$0xff] }
 0x597   :  { %1435 = vmatprep.subr.mxu0 %v2248_v31  ;;  %2656 = vst [vmem:[#allocation34_spill] sm:$0xff] %v2278_v21  ;;  %v2284_v31 = vld [vmem:[%s2560_s6 + $0x98] sm:$0xff] }
 0x598   :  { %1436 = vmatpush3.msra.mxu0 %v2254_v33  ;;  %2657 = vst [vmem:[#allocation35_spill] sm:$0xff] %v2284_v31  ;;  %v2290_v33 = vld [vmem:[%s2560_s6 + $0x18] sm:$0xff] }
 0x599   :  { %1437 = vmatprep.subr.mxu0 %v2260_v1  ;;  %2658 = vst [vmem:[#allocation36_spill] sm:$0xff] %v2290_v33 }
 0x59a   :  { %1438 = vmatpush3.msra.mxu0 %v2266_v32  ;;  %v2298_v32 = vld [vmem:[%s2560_s6 + $0x90] sm:$0xff] }
 0x59b   :  { %1439 = vmatprep.subr.mxu0 %v2272_v16  ;;  %2659 = vst [vmem:[#allocation37_spill] sm:$0xff] %v2298_v32  ;;  %v2304_v16 = vld [vmem:[%s2560_s6 + $0x10] sm:$0xff] }
 0x59c   :  { %1440 = vmatpush3.msra.mxu0 %v2278_v21  ;;  %2660 = vst [vmem:[#allocation38_spill] sm:$0xff] %v2304_v16 }
 0x59d   :  { %1441 = vmatprep.subr.mxu0 %v2284_v31  ;;  %v2310_v31 = vld [vmem:[%s2560_s6 + $0x88] sm:$0xff] }
 0x59e   :  { %1442 = vmatpush3.msra.mxu0 %v2290_v33  ;;  %2661 = vst [vmem:[#allocation39_spill] sm:$0xff] %v2310_v31  ;;  %v2316_v33 = vld [vmem:[%s2560_s6 + $0x8] sm:$0xff] }
 0x59f   :  { %1443 = vmatprep.subr.mxu0 %v2298_v32  ;;  %2662 = vst [vmem:[#allocation40_spill] sm:$0xff] %v2316_v33  ;;  %v2322_v32 = vld [vmem:[%s2560_s6 + $0x80] sm:$0xff] }
 0x5a0   :  { %1444 = vmatpush3.msra.mxu0 %v2304_v16  ;;  %v2327_v16 = vld [vmem:[%s2560_s6] sm:$0xff]  ;;  %s1734_s6 = smov [#allocation2]  }
 0x5a1   :  { %1445 = vmatprep.subr.mxu0 %v2310_v31 }
 0x5a2   :  { %1446 = vmatpush3.msra.mxu0 %v2316_v33 }
 0x5a3   :  { %1447 = vmatprep.subr.mxu0 %v2322_v32 }
 0x5a4   :  { %1448 = vmatpush3.msra.mxu0 %v2327_v16 }
 0x5a5   :  { %655 = vmatprep.subr.mxu0 %v1850_v23 }
 0x645   :  { %v446_v31 = vpop.f32.mrf.mxu0 }
 0x646   :  { %v451_v1 = vmul.f32 %v446_v31, %v2102_v15 }
 0x647   :  { %v448_v21 = vpop.f32.mrf.mxu0 }
 0x648   :  { %v452_v33 = vmul.f32 %v448_v21, %v2097_v14 }
 0x64a   :  { %517 = vmatprep.mubr.f32.mxu0 %v452_v33 }
 0x64b   :  { %518 = vmatmul.mubr.f32.vlgmr.msra.gmra.mxu0 %v451_v1 }
 0x64c   :  { %656 = vmatpush1.msra.mxu0 %v1855_v24  ;;  %695 = vmatprep.mubr.f32.mxu0 %v2663_v17 }
 0x64d   :  { %657 = vmatprep.subr.mxu0 %v1860_v25 }
 0x64e   :  { %658 = vmatpush1.msra.mxu0 %v1866_v26 }
 0x64f   :  { %659 = vmatprep.subr.mxu0 %v1872_v27 }
 0x650   :  { %660 = vmatpush1.msra.mxu0 %v1878_v28 }
 0x651   :  { %661 = vmatprep.subr.mxu0 %v1884_v29 }
 0x652   :  { %662 = vmatpush1.msra.mxu0 %v1890_v30 }
 0x653   :  { %818 = vmatprep.subr.mxu0 %v2129_v18 }
 0x70b   :  { %v1449_v21 = vpop.f32.mrf.mxu0 }
 0x70d   :  { %v1450_v1 = vpop.f32.mrf.mxu0 }
 0x70e   :  { %v1451_v31 = vadd.f32 %v1450_v1, %v1449_v21 }
 0x710   :  { %525 = vrot.lane.b32.xlu0 %v1451_v31, %s1733_s19 }
 0x782   :  { %v526_v33 = vpop.permute.xlu0 %525 }
 0x783   :  { %v528_v26 = vsel %vm217_vm1, %v1908_v36, %v526_v33 }
 0x784   :  { %1646 = vmatmul.mubr.msk.f32.vlgmr.msra.gmra.mxu1 %vm116_vm3, %v528_v26 }
 0x785   :  { %1462 = vmatpush3.msra.mxu1 %v1906_v35 }
 0x786   :  { %1463 = vmatprep.subr.mxu1 %v1913_v37 }
 0x787   :  { %1464 = vmatpush3.msra.mxu1 %v1920_v38 }
 0x788   :  { %1465 = vmatprep.subr.mxu1 %v1926_v39 }
 0x789   :  { %1466 = vmatpush3.msra.mxu1 %v1932_v40 }
 0x78a   :  { %1467 = vmatprep.subr.mxu1 %v1938_v41 }
 0x78b   :  { %1468 = vmatpush3.msra.mxu1 %v1944_v42 }
 0x78c   :  { %1469 = vmatprep.subr.mxu1 %v1950_v43 }
 0x78d   :  { %1470 = vmatpush3.msra.mxu1 %v1956_v44 }
 0x78e   :  { %1471 = vmatprep.subr.mxu1 %v1962_v45 }
 0x78f   :  { %1472 = vmatpush3.msra.mxu1 %v1968_v46 }
 0x790   :  { %1473 = vmatprep.subr.mxu1 %v1974_v47 }
 0x791   :  { %1474 = vmatpush3.msra.mxu1 %v1980_v48 }
 0x792   :  { %1475 = vmatprep.subr.mxu1 %v1986_v49 }
 0x793   :  { %1476 = vmatpush3.msra.mxu1 %v1992_v50 }
 0x794   :  { %1477 = vmatprep.subr.mxu1 %v1998_v51 }
 0x795   :  { %1478 = vmatpush3.msra.mxu1 %v2004_v52 }
 0x796   :  { %1479 = vmatprep.subr.mxu1 %v2010_v53 }
 0x797   :  { %1480 = vmatpush3.msra.mxu1 %v2016_v54 }
 0x798   :  { %1481 = vmatprep.subr.mxu1 %v2022_v55 }
 0x799   :  { %1482 = vmatpush3.msra.mxu1 %v2028_v56 }
 0x79a   :  { %1483 = vmatprep.subr.mxu1 %v2034_v57 }
 0x79b   :  { %1484 = vmatpush3.msra.mxu1 %v2040_v58 }
 0x79c   :  { %1485 = vmatprep.subr.mxu1 %v2046_v59 }
 0x79d   :  { %1486 = vmatpush3.msra.mxu1 %v2052_v60 }
 0x79e   :  { %1487 = vmatprep.subr.mxu1 %v2060_v61 }
 0x79f   :  { %1488 = vmatpush3.msra.mxu1 %v2066_v62 }
 0x7a0   :  { %1489 = vmatprep.subr.mxu1 %v2072_v63 }
 0x7a1   :  { %1490 = vmatpush3.msra.mxu1 %v2078_v10 }
 0x7a2   :  { %1491 = vmatprep.subr.mxu1 %v2084_v11 }
 0x7a3   :  { %1492 = vmatpush3.msra.mxu1 %v2089_v12 }
 0x7a4   :  { %1648 = vmatprep.subr.mxu1 %v2663_v17 }
 0x844   :  { %v598_v26 = vpop.f32.mrf.mxu1 }
 0x845   :  { %v599_v36 = vadd.f32 %v1839_v9, %v598_v26 }
 0x846   :  { %v1647_v21 = vpop.f32.mrf.mxu1 }
 0x847   :  { %1684 = vtanh.f32 %v599_v36  ;;  %v1366_v31 = vmul.f32 -1.442695, %v599_v36 }
 0x849   :  { %1686 = vpow2.f32 %v1366_v31 }
 0x854   :  { %v1685_v1 = vpop.eup %1684 }
 0x855   :  { %611 = vrot.lane.b32.xlu1 %v1685_v1, %s1732_s1 }
 0x856   :  { %v1687_v33 = vpop.eup %1686 }
 0x857   :  { %v605_v63 = vadd.f32 1.0, %v1687_v33  ;;  %v2665_v33 = vld [vmem:[#allocation15_spill] sm:$0xff] }
 0x859   :  { %1688 = vrcp.f32 %v605_v63 }
 0x866   :  { %v1689_v10 = vpop.eup %1688 }
 0x867   :  { %v609_v12 = vmul.f32 %v1689_v10, %v1844_v22 }
 0x8c7   :  { %v612_v62 = vpop.permute.xlu1 %611 }
 0x8c8   :  { %v614_v11 = vmul.f32 %v1689_v10, %v612_v62 }
 0x8ca   :  { %616 = vrot.lane.b32.xlu0 %v614_v11, %s1733_s19 }
 0x93c   :  { %v617_v61 = vpop.permute.xlu0 %616 }
 0x93d   :  { %v2383_v60 = vadd.f32 %v617_v61, %v609_v12 }
 0x93f   :  { %1690 = vtanh.f32 %v2383_v60 }
 0x94c   :  { %v1691_v26 = vpop.eup %1690 }
 0x94d   :  { %622 = vrot.lane.b32.xlu1 %v1691_v26, %s1732_s1  ;;  %v2666_v26 = vld [vmem:[#allocation16_spill] sm:$0xff] }
 0x9bf   :  { %v623_v36 = vpop.permute.xlu1 %622 }
 0x9c0   :  { %v625_v21 = vmul.f32 %v1689_v10, %v623_v36  ;;  %v2667_v36 = vld [vmem:[#allocation17_spill] sm:$0xff] }
 0x9c2   :  { %627 = vrot.lane.b32.xlu0 %v625_v21, %s1733_s19  ;;  %v2668_v21 = vld [vmem:[#allocation18_spill] sm:$0xff] }
 0xa34   :  { %v2388_v63 = vpop.permute.xlu0 %627 }
 0xa35   :  { %1367 = vmatmul.mubr.msk.f32.vlgmr.msra.gmra.mxu0 %vm217_vm1, %v2388_v63 }
 0xa36   :  { %819 = vmatpush1.msra.mxu0 %v2134_v19  ;;  %852 = vmatprep.mubr.f32.mxu0 %v2663_v17 }
 0xa37   :  { %1496 = vmatprep.subr.mxu0 %v2141_v20 }
 0xaf5   :  { %v697_v22 = vpop.f32.mrf.mxu0 }
 0xaf6   :  { %v702_v11 = vmul.f32 %v697_v22, %v2102_v15  ;;  %v2669_v22 = vld [vmem:[#allocation19_spill] sm:$0xff] }
 0xaf7   :  { %v699_v61 = vpop.f32.mrf.mxu0 }
 0xaf8   :  { %v703_v62 = vmul.f32 %v699_v61, %v2097_v14  ;;  %v2670_v61 = vld [vmem:[#allocation20_spill] sm:$0xff] }
 0xafa   :  { %768 = vmatprep.mubr.f32.mxu1 %v703_v62  ;;  %v2671_v62 = vld [vmem:[#allocation21_spill] sm:$0xff] }
 0xafb   :  { %769 = vmatmul.mubr.f32.vlgmr.msra.gmra.mxu1 %v702_v11  ;;  %v2672_v11 = vld [vmem:[#allocation22_spill] sm:$0xff] }
 0xafc   :  { %1649 = vmatpush3.msra.mxu1 %v1778_v0  ;;  %1664 = vmatprep.mubr.msk.f32.mxu1 %vm1731_vm0, %v2663_v17 }
 0xafd   :  { %1650 = vmatprep.subr.mxu1 %v2663_v17 }
 0xafe   :  { %1651 = vmatpush3.msra.mxu1 %v1784_v2 }
 0xaff   :  { %1652 = vmatprep.subr.mxu1 %v2663_v17 }
 0xb00   :  { %1653 = vmatpush3.msra.mxu1 %v1794_v3 }
 0xb01   :  { %1654 = vmatprep.subr.mxu1 %v2663_v17 }
 0xb02   :  { %1655 = vmatpush3.msra.mxu1 %v1801_v4 }
 0xb03   :  { %1656 = vmatprep.subr.mxu1 %v2663_v17 }
 0xb04   :  { %1657 = vmatpush3.msra.mxu1 %v1808_v5 }
 0xb05   :  { %1658 = vmatprep.subr.mxu1 %v2663_v17 }
 0xb06   :  { %1659 = vmatpush3.msra.mxu1 %v1815_v6 }
 0xb07   :  { %1660 = vmatprep.subr.mxu1 %v2663_v17 }
 0xb08   :  { %1661 = vmatpush3.msra.mxu1 %v1822_v7 }
 0xb09   :  { %1662 = vmatprep.subr.mxu1 %v2663_v17 }
 0xb0a   :  { %1663 = vmatpush3.msra.mxu1 %v1829_v8 }
 0xb0b   :  { %1226 = vmatprep.subr.mxu1 %v2129_v18  ;;  %v2664_v18 = vld [vmem:[#allocation14_spill] sm:$0xff] }
 0xbbb   :  { %v1493_v0 = vpop.f32.mrf.mxu1 }
 0xbbd   :  { %v1494_v2 = vpop.f32.mrf.mxu1 }
 0xbbe   :  { %v1495_v3 = vadd.f32 %v1494_v2, %v1493_v0  ;;  %v2673_v0 = vld [vmem:[#allocation23_spill] sm:$0xff]  ;;  %v2674_v2 = vld [vmem:[#allocation24_spill] sm:$0xff] }
 0xbc0   :  { %v774_v4 = vsel %vm365_vm2, %v1495_v3, -inf }
 0xbc1   :  { %775 = vmax.xlane.f32.xlu1 %v774_v4  ;;  %v2676_v4 = vld [vmem:[#allocation26_spill] sm:$0xff] }
 0xc4a   :  { %v776_v5 = vpop.xlane.xlu1 %775 }
 0xc4b   :  { %v777_v10 = vsub.f32 %v1495_v3, %v776_v5  ;;  %v2675_v3 = vld [vmem:[#allocation25_spill] sm:$0xff]  ;;  %v2677_v5 = vld [vmem:[#allocation27_spill] sm:$0xff] }
 0xc4d   :  { %v778_v12 = vmul.f32 1.442695, %v777_v10  ;;  %v2678_v10 = vld [vmem:[#allocation28_spill] sm:$0xff] }
 0xc4f   :  { %1692 = vpow2.f32 %v778_v12  ;;  %v2679_v12 = vld [vmem:[#allocation29_spill] sm:$0xff] }
 0xc5c   :  { %v1693_v6 = vpop.eup %1692 }
 0xc5d   :  { %v780_v1 = vsel %vm365_vm2, %v1693_v6, 0.0 }
 0xc5e   :  { %781 = vadd.xlane.f32.xlu0 %v780_v1  ;;  %v2681_v1 = vld [vmem:[#allocation31_spill] sm:$0xff] }
 0xce7   :  { %v782_v7 = vpop.xlane.xlu0 %781 }
 0xce8   :  { %1694 = vrcp.f32 %v782_v7  ;;  %v2682_v7 = vld [vmem:[#allocation32_spill] sm:$0xff] }
 0xcf5   :  { %v1695_v31 = vpop.eup %1694 }
 0xcf6   :  { %v784_v8 = vmul.f32 %v1695_v31, %v1693_v6  ;;  %v2680_v6 = vld [vmem:[#allocation30_spill] sm:$0xff]  ;;  %v2683_v31 = vld [vmem:[#allocation33_spill] sm:$0xff] }
 0xcf8   :  { %1368 = vmatmul.mubr.msk.f32.vlgmr.msra.gmra.mxu0 %vm365_vm2, %v784_v8  ;;  %v2684_v8 = vld [vmem:[#allocation34_spill] sm:$0xff] }
 0xcf9   :  { %1497 = vmatpush3.msra.mxu0 %v2147_v34 }
 0xcfa   :  { %1498 = vmatprep.subr.mxu0 %v2152_v13 }
 0xcfb   :  { %1499 = vmatpush3.msra.mxu0 %v2664_v18 }
 0xcfc   :  { %1500 = vmatprep.subr.mxu0 %v2665_v33 }
 0xcfd   :  { %1501 = vmatpush3.msra.mxu0 %v2666_v26 }
 0xcfe   :  { %1502 = vmatprep.subr.mxu0 %v2667_v36 }
 0xcff   :  { %1503 = vmatpush3.msra.mxu0 %v2668_v21 }
 0xd00   :  { %1504 = vmatprep.subr.mxu0 %v2669_v22 }
 0xd01   :  { %1505 = vmatpush3.msra.mxu0 %v2670_v61 }
 0xd02   :  { %1506 = vmatprep.subr.mxu0 %v2671_v62 }
 0xd03   :  { %1507 = vmatpush3.msra.mxu0 %v2672_v11 }
 0xd04   :  { %1508 = vmatprep.subr.mxu0 %v2673_v0 }
 0xd05   :  { %1509 = vmatpush3.msra.mxu0 %v2674_v2  ;;  %v2685_v2 = vld [vmem:[#allocation35_spill] sm:$0xff] }
 0xd06   :  { %1510 = vmatprep.subr.mxu0 %v2675_v3  ;;  %v2686_v3 = vld [vmem:[#allocation36_spill] sm:$0xff] }
 0xd07   :  { %1511 = vmatpush3.msra.mxu0 %v2676_v4  ;;  %v2687_v4 = vld [vmem:[#allocation37_spill] sm:$0xff] }
 0xd08   :  { %1512 = vmatprep.subr.mxu0 %v2677_v5  ;;  %v2688_v5 = vld [vmem:[#allocation38_spill] sm:$0xff] }
 0xd09   :  { %1513 = vmatpush3.msra.mxu0 %v2678_v10  ;;  %v2689_v10 = vld [vmem:[#allocation39_spill] sm:$0xff] }
 0xd0a   :  { %1514 = vmatprep.subr.mxu0 %v2679_v12  ;;  %v2690_v12 = vld [vmem:[#allocation40_spill] sm:$0xff] }
 0xd0b   :  { %1515 = vmatpush3.msra.mxu0 %v2680_v6 }
 0xd0c   :  { %1516 = vmatprep.subr.mxu0 %v2681_v1 }
 0xd0d   :  { %1517 = vmatpush3.msra.mxu0 %v2682_v7 }
 0xd0e   :  { %1518 = vmatprep.subr.mxu0 %v2683_v31 }
 0xd0f   :  { %1519 = vmatpush3.msra.mxu0 %v2684_v8 }
 0xd10   :  { %1520 = vmatprep.subr.mxu0 %v2685_v2 }
 0xd11   :  { %1521 = vmatpush3.msra.mxu0 %v2686_v3 }
 0xd12   :  { %1522 = vmatprep.subr.mxu0 %v2687_v4 }
 0xd13   :  { %1523 = vmatpush3.msra.mxu0 %v2688_v5 }
 0xd14   :  { %1524 = vmatprep.subr.mxu0 %v2689_v10 }
 0xd15   :  { %1525 = vmatpush3.msra.mxu0 %v2690_v12  ;;  %v2691_v12 = vld [vmem:[#allocation5_spill] sm:$0xff] }
 0xd16   :  { %1526 = vmatprep.subr.mxu0 %v2322_v32 }
 0xd17   :  { %1527 = vmatpush3.msra.mxu0 %v2327_v16 }
 0xd18   :  { %1063 = vmatprep.subr.mxu0 %v1850_v23  ;;  %v2692_v23 = vld [vmem:[#allocation6_spill] sm:$0xff] }
 0xdb8   :  { %v854_v31 = vpop.f32.mrf.mxu0 }
 0xdb9   :  { %v859_v3 = vmul.f32 %v854_v31, %v2102_v15 }
 0xdba   :  { %v856_v8 = vpop.f32.mrf.mxu0 }
 0xdbb   :  { %v860_v2 = vmul.f32 %v856_v8, %v2097_v14 }
 0xdbd   :  { %925 = vmatprep.mubr.f32.mxu0 %v860_v2 }
 0xdbe   :  { %926 = vmatmul.mubr.f32.vlgmr.msra.gmra.mxu0 %v859_v3 }
 0xdbf   :  { %1064 = vmatpush1.msra.mxu0 %v1855_v24  ;;  %1103 = vmatprep.mubr.f32.mxu0 %v2663_v17 }
 0xdc0   :  { %1065 = vmatprep.subr.mxu0 %v1860_v25 }
 0xdc1   :  { %1066 = vmatpush1.msra.mxu0 %v2691_v12 }
 0xdc2   :  { %1067 = vmatprep.subr.mxu0 %v1872_v27 }
 0xdc3   :  { %1068 = vmatpush1.msra.mxu0 %v1878_v28 }
 0xdc4   :  { %1069 = vmatprep.subr.mxu0 %v1884_v29 }
 0xdc5   :  { %1070 = vmatpush1.msra.mxu0 %v1890_v30 }
 0xdc6   :  { %1540 = vmatprep.subr.mxu0 %v2692_v23 }
 0xe7e   :  { %v1528_v2 = vpop.f32.mrf.mxu0 }
 0xe80   :  { %v1529_v3 = vpop.f32.mrf.mxu0 }
 0xe81   :  { %v1530_v31 = vadd.f32 %v1529_v3, %v1528_v2 }
 0xe83   :  { %933 = vrot.lane.b32.xlu0 %v1530_v31, %s1733_s19 }
 0xef5   :  { %v934_v24 = vpop.permute.xlu0 %933 }
 0xef6   :  { %v936_v25 = vsel %vm217_vm1, %v2388_v63, %v934_v24 }
 0xef7   :  { %1665 = vmatmul.mubr.msk.f32.vlgmr.msra.gmra.mxu1 %vm116_vm3, %v936_v25 }
 0xef8   :  { %1227 = vmatpush1.msra.mxu1 %v2134_v19  ;;  %1260 = vmatprep.mubr.f32.mxu1 %v2663_v17 }
 0xef9   :  { %1575 = vmatprep.subr.mxu1 %v2141_v20 }
 0xfb7   :  { %v1006_v27 = vpop.f32.mrf.mxu1 }
 0xfb8   :  { %v1007_v28 = vadd.f32 %v1839_v9, %v1006_v27 }
 0xfb9   :  { %v1666_v29 = vpop.f32.mrf.mxu1 }
 0xfba   :  { %1696 = vtanh.f32 %v1007_v28  ;;  %v1370_v12 = vmul.f32 -1.442695, %v1007_v28 }
 0xfbc   :  { %1698 = vpow2.f32 %v1370_v12 }
 0xfc7   :  { %v1697_v30 = vpop.eup %1696 }
 0xfc8   :  { %1019 = vrot.lane.b32.xlu1 %v1697_v30, %s1732_s1 }
 0xfc9   :  { %v1699_v8 = vpop.eup %1698 }
 0xfca   :  { %v1013_v63 = vadd.f32 1.0, %v1699_v8 }
 0xfcc   :  { %1700 = vrcp.f32 %v1013_v63 }
 0xfd9   :  { %v1701_v23 = vpop.eup %1700 }
 0xfda   :  { %v1017_v20 = vmul.f32 %v1701_v23, %v2383_v60  ;;  %v2701_v60 = vld [vmem:[#allocation25_spill] sm:$0xff] }
0x103a   :  { %v1020_v2 = vpop.permute.xlu1 %1019 }
0x103b   :  { %v1022_v19 = vmul.f32 %v1701_v23, %v1020_v2 }
0x103d   :  { %1024 = vrot.lane.b32.xlu1 %v1022_v19, %s1733_s19 }
0x10af   :  { %v1025_v17 = vpop.permute.xlu1 %1024 }
0x10b0   :  { %v1027_v3 = vadd.f32 %v1025_v17, %v1017_v20 }
0x10b2   :  { %1702 = vtanh.f32 %v1027_v3 }
0x10bf   :  { %v1703_v9 = vpop.eup %1702 }
0x10c0   :  { %1030 = vrot.lane.b32.xlu0 %v1703_v9, %s1732_s1  ;;  %s1353_s1 = sshll.u32 %s1734_s6, 4  ;;  %s1354_s1 = int_to_ptr.vmem [resolvable:$true] %s1353_s1 }
0x10c1   :  { %s1708_s18 = scalar_lea.vmem %s1354_s1, 128  ;;  %p1713_p1 = scmp.lt.s32.totalorder %s1354_s1, %s1354_s1 }
0x10c2   :  { %p1709_p0 = scmp.ne.s32.totalorder %s1354_s1, %s1708_s18  ;;  %p1714_p2 = scmp.lt.s32.totalorder %s1708_s18, %s1708_s18 }
0x10c4   :  { %p1715_p3 = por %p1714_p2, %p1713_p1 }
0x10c6   :  { %p1716_p4 = pnand %p1715_p3, %p1709_p0 }
0x1132   :  { %v1031_v31 = vpop.permute.xlu0 %1030 }
0x1133   :  { %v1033_v24 = vmul.f32 %v1701_v23, %v1031_v31 }
0x1135   :  { %1035 = vrot.lane.b32.xlu1 %v1033_v24, %s1733_s19 }
0x11a7   :  { %v2474_v25 = vpop.permute.xlu1 %1035 }
0x11a8   :  { %1371 = vmatmul.mubr.msk.f32.vlgmr.msra.gmra.mxu0 %vm217_vm1, %v2474_v25 }
0x11a9   :  { %1541 = vmatpush3.msra.mxu0 %v1906_v35  ;;  %v2693_v35 = vld [vmem:[#allocation7_spill] sm:$0xff] }
0x11aa   :  { %1542 = vmatprep.subr.mxu0 %v1913_v37  ;;  %v2694_v37 = vld [vmem:[#allocation8_spill] sm:$0xff] }
0x11ab   :  { %1543 = vmatpush3.msra.mxu0 %v1920_v38  ;;  %v2695_v38 = vld [vmem:[#allocation9_spill] sm:$0xff] }
0x11ac   :  { %1544 = vmatprep.subr.mxu0 %v1926_v39  ;;  %v2696_v39 = vld [vmem:[#allocation10_spill] sm:$0xff] }
0x11ad   :  { %1545 = vmatpush3.msra.mxu0 %v1932_v40  ;;  %v2697_v40 = vld [vmem:[#allocation11_spill] sm:$0xff] }
0x11ae   :  { %1546 = vmatprep.subr.mxu0 %v1938_v41  ;;  %v2698_v41 = vld [vmem:[#allocation12_spill] sm:$0xff] }
0x11af   :  { %1547 = vmatpush3.msra.mxu0 %v1944_v42  ;;  %v2699_v42 = vld [vmem:[#allocation13_spill] sm:$0xff] }
0x11b0   :  { %1548 = vmatprep.subr.mxu0 %v1950_v43 }
0x11b1   :  { %1549 = vmatpush3.msra.mxu0 %v1956_v44 }
0x11b2   :  { %1550 = vmatprep.subr.mxu0 %v1962_v45 }
0x11b3   :  { %1551 = vmatpush3.msra.mxu0 %v1968_v46 }
0x11b4   :  { %1552 = vmatprep.subr.mxu0 %v1974_v47 }
0x11b5   :  { %1553 = vmatpush3.msra.mxu0 %v1980_v48 }
0x11b6   :  { %1554 = vmatprep.subr.mxu0 %v1986_v49 }
0x11b7   :  { %1555 = vmatpush3.msra.mxu0 %v1992_v50 }
0x11b8   :  { %1556 = vmatprep.subr.mxu0 %v1998_v51 }
0x11b9   :  { %1557 = vmatpush3.msra.mxu0 %v2004_v52 }
0x11ba   :  { %1558 = vmatprep.subr.mxu0 %v2010_v53 }
0x11bb   :  { %1559 = vmatpush3.msra.mxu0 %v2016_v54 }
0x11bc   :  { %1560 = vmatprep.subr.mxu0 %v2022_v55 }
0x11bd   :  { %1561 = vmatpush3.msra.mxu0 %v2028_v56 }
0x11be   :  { %1562 = vmatprep.subr.mxu0 %v2034_v57 }
0x11bf   :  { %1563 = vmatpush3.msra.mxu0 %v2040_v58 }
0x11c0   :  { %1564 = vmatprep.subr.mxu0 %v2046_v59  ;;  %v2700_v59 = vld [vmem:[#allocation24_spill] sm:$0xff] }
0x11c1   :  { %1565 = vmatpush3.msra.mxu0 %v2693_v35 }
0x11c2   :  { %1566 = vmatprep.subr.mxu0 %v2694_v37 }
0x11c3   :  { %1567 = vmatpush3.msra.mxu0 %v2695_v38 }
0x11c4   :  { %1568 = vmatprep.subr.mxu0 %v2696_v39 }
0x11c5   :  { %1569 = vmatpush3.msra.mxu0 %v2697_v40 }
0x11c6   :  { %1570 = vmatprep.subr.mxu0 %v2698_v41 }
0x11c7   :  { %1571 = vmatpush3.msra.mxu0 %v2699_v42 }
0x1268   :  { %v1105_v43 = vpop.f32.mrf.mxu0 }
0x1269   :  { %v1110_v46 = vmul.f32 %v1105_v43, %v2102_v15 }
0x126a   :  { %v1107_v44 = vpop.f32.mrf.mxu0 }
0x126b   :  { %v1111_v45 = vmul.f32 %v1107_v44, %v2097_v14 }
0x126d   :  { %1176 = vmatprep.mubr.f32.mxu0 %v1111_v45 }
0x126e   :  { %1177 = vmatmul.mubr.f32.vlgmr.msra.gmra.mxu0 %v1110_v46 }
0x132e   :  { %v1572_v47 = vpop.f32.mrf.mxu0 }
0x1330   :  { %v1573_v48 = vpop.f32.mrf.mxu0 }
0x1331   :  { %v1574_v49 = vadd.f32 %v1573_v48, %v1572_v47 }
0x1333   :  { %v1182_v50 = vsel %vm365_vm2, %v1574_v49, -inf }
0x1334   :  { %1183 = vmax.xlane.f32.xlu0 %v1182_v50 }
0x13bd   :  { %v1184_v51 = vpop.xlane.xlu0 %1183 }
0x13be   :  { %v1185_v52 = vsub.f32 %v1574_v49, %v1184_v51 }
0x13c0   :  { %v1186_v53 = vmul.f32 1.442695, %v1185_v52 }
0x13c2   :  { %1704 = vpow2.f32 %v1186_v53 }
0x13cf   :  { %v1705_v54 = vpop.eup %1704 }
0x13d0   :  { %v1188_v55 = vsel %vm365_vm2, %v1705_v54, 0.0 }
0x13d1   :  { %1189 = vadd.xlane.f32.xlu1 %v1188_v55 }
0x145a   :  { %v1190_v56 = vpop.xlane.xlu1 %1189 }
0x145b   :  { %1706 = vrcp.f32 %v1190_v56 }
0x1468   :  { %v1707_v57 = vpop.eup %1706 }
0x1469   :  { %v1192_v58 = vmul.f32 %v1707_v57, %v1705_v54 }
0x146b   :  { %1372 = vmatmul.mubr.msk.f32.vlgmr.msra.gmra.mxu1 %vm365_vm2, %v1192_v58 }
0x146c   :  { %1576 = vmatpush3.msra.mxu1 %v2147_v34  ;;  %v2702_v34 = vld [vmem:[#allocation26_spill] sm:$0xff] }
0x146d   :  { %1577 = vmatprep.subr.mxu1 %v2152_v13  ;;  %v2703_v13 = vld [vmem:[#allocation27_spill] sm:$0xff] }
0x146e   :  { %1578 = vmatpush3.msra.mxu1 %v2664_v18  ;;  %v2704_v18 = vld [vmem:[#allocation28_spill] sm:$0xff] }
0x146f   :  { %1579 = vmatprep.subr.mxu1 %v2665_v33  ;;  %v2705_v33 = vld [vmem:[#allocation29_spill] sm:$0xff] }
0x1470   :  { %1580 = vmatpush3.msra.mxu1 %v2666_v26  ;;  %v2706_v26 = vld [vmem:[#allocation33_spill] sm:$0xff] }
0x1471   :  { %1581 = vmatprep.subr.mxu1 %v2667_v36  ;;  %v2707_v36 = vld [vmem:[#allocation34_spill] sm:$0xff] }
0x1472   :  { %1582 = vmatpush3.msra.mxu1 %v2668_v21  ;;  %v2708_v21 = vld [vmem:[#allocation35_spill] sm:$0xff] }
0x1473   :  { %1583 = vmatprep.subr.mxu1 %v2669_v22  ;;  %v2709_v22 = vld [vmem:[#allocation36_spill] sm:$0xff] }
0x1474   :  { %1584 = vmatpush3.msra.mxu1 %v2670_v61  ;;  %v2710_v61 = vld [vmem:[#allocation40_spill] sm:$0xff] }
0x1475   :  { %1585 = vmatprep.subr.mxu1 %v2671_v62 }
0x1476   :  { %1586 = vmatpush3.msra.mxu1 %v2672_v11 }
0x1477   :  { %1587 = vmatprep.subr.mxu1 %v2673_v0 }
0x1478   :  { %1588 = vmatpush3.msra.mxu1 %v2700_v59 }
0x1479   :  { %1589 = vmatprep.subr.mxu1 %v2701_v60 }
0x147a   :  { %1590 = vmatpush3.msra.mxu1 %v2702_v34 }
0x147b   :  { %1591 = vmatprep.subr.mxu1 %v2703_v13 }
0x147c   :  { %1592 = vmatpush3.msra.mxu1 %v2704_v18 }
0x147d   :  { %1593 = vmatprep.subr.mxu1 %v2705_v33 }
0x147e   :  { %1594 = vmatpush3.msra.mxu1 %v2680_v6 }
0x147f   :  { %1595 = vmatprep.subr.mxu1 %v2681_v1 }
0x1480   :  { %1596 = vmatpush3.msra.mxu1 %v2682_v7 }
0x1481   :  { %1597 = vmatprep.subr.mxu1 %v2706_v26 }
0x1482   :  { %1598 = vmatpush3.msra.mxu1 %v2707_v36 }
0x1483   :  { %1599 = vmatprep.subr.mxu1 %v2708_v21 }
0x1484   :  { %1600 = vmatpush3.msra.mxu1 %v2709_v22 }
0x1485   :  { %1601 = vmatprep.subr.mxu1 %v2687_v4 }
0x1486   :  { %1602 = vmatpush3.msra.mxu1 %v2688_v5 }
0x1487   :  { %1603 = vmatprep.subr.mxu1 %v2689_v10 }
0x1488   :  { %1604 = vmatpush3.msra.mxu1 %v2710_v61 }
0x1489   :  { %1605 = vmatprep.subr.mxu1 %v2322_v32 }
0x148a   :  { %1606 = vmatpush3.msra.mxu1 %v2327_v16 }
0x152b   :  { %v1262_v62 = vpop.f32.mrf.mxu1 }
0x152c   :  { %v1267_v6 = vmul.f32 %v1262_v62, %v2102_v15 }
0x152d   :  { %v1264_v11 = vpop.f32.mrf.mxu1 }
0x152e   :  { %v1268_v0 = vmul.f32 %v1264_v11, %v2097_v14 }
0x1530   :  { %1333 = vmatprep.mubr.f32.mxu1 %v1268_v0 }
0x1531   :  { %1334 = vmatmul.mubr.f32.vlgmr.msra.gmra.mxu1 %v1267_v6 }
0x15f1   :  { %v1607_v1 = vpop.f32.mrf.mxu1 }
0x15f3   :  { %v1608_v4 = vpop.f32.mrf.mxu1 }
0x15f4   :  { %v1609_v7 = vadd.f32 %v1608_v4, %v1607_v1 }
0x15f6   :  { %1341 = vrot.lane.b32.xlu0 %v1609_v7, %s1733_s19 }
0x1668   :  { %v1342_v5 = vpop.permute.xlu0 %1341 }
0x1669   :  { %v1344_v32 = vsel %vm217_vm1, %v2474_v25, %v1342_v5 }
0x166a   :  { %v1345_v16 = vsel %vm116_vm3, %v1344_v32, 0.0 }
0x166b   :  { %1346 = vst [vmem:[#allocation2] sm:$0xff] %v1345_v16 }
0x166c   :  { %1719 = shalt.err (!%p1716_p4)
}
0x166d   :  { %1356 = dma.vmem_to_hbm [thread:$0]  %s1354_s1, 128, %s2561_s7, [#allocation3]  }
0x166e   :  { %1728 = dma.done.wait [#allocation3], 128  }
0x166f   :  { %1729 = vsyncadd [#allocation3], 4294967168 }
0x1670   :  { %1360 = vsyncpa [#allocation3], 1 }

</bundles_post_ra>
